<compile_context>
chip_gen: v6e
topology: v6e:2x2x1
jax: 0.10.0
libtpu: 0.0.40
codegen_flags: <defaults>
</compile_context>

<pallas_src>
import functools

import jax
import jax.numpy as jnp
from jax.experimental import pallas as pl
from jax.experimental.pallas import tpu as pltpu

QMAX = 127.0   # 2**(8-1) - 1
QMIN = -128.0  # -2**(8-1)


def _mlgru_kernel(x_ref, h_ref, wcat_ref, bcat_ref, o_ref, h_out_ref,
                  *, eps, hidden):
    x = x_ref[...].astype(jnp.float32)

    # ---- rms_norm (RMSNormFunction.forward): mean / biased var over last dim
    mean = jnp.mean(x, axis=-1, keepdims=True)
    xc = x - mean
    var = jnp.mean(xc * xc, axis=-1, keepdims=True)            # unbiased=False
    r = 1.0 / jnp.sqrt(jnp.maximum(var + eps, 1e-10))          # clamp(min=1e-10)
    y = r * xc

    # ---- activation_quant: GLOBAL abs-max, 8-bit integer codes.
    # Dequantization by `scale` is deferred to after the (linear) matmul,
    # which is mathematically identical and keeps the MXU operands exact.
    y = jnp.where(jnp.isnan(y), 0.0, y)                        # nan_to_num
    amax = jnp.max(jnp.abs(y))
    scale = jnp.where(jnp.logical_or(amax == 0.0, jnp.isnan(amax)),
                      1.0, amax / QMAX)
    codes = jnp.clip(jnp.round(y / scale), QMIN, QMAX)         # ints in [-128,127]

    # ---- fused ternary gate projection: one (B,N) @ (N,3N) bf16 matmul with
    # f32 accumulation.  Codes and {-1,0,+1} weights are exact in bf16 and
    # every partial sum is an integer < 2^24, so this is exact.
    acc = jnp.dot(codes.astype(jnp.bfloat16), wcat_ref[...],
                  preferred_element_type=jnp.float32)          # (B, 3N) f32
    lin = acc * scale + bcat_ref[...]                          # dequant + bias

    # ---- gates: one sigmoid over the whole lane-dense slab, then static,
    # 128-aligned slices.
    sig = jax.nn.sigmoid(lin)                                  # (B, 3N)
    sig_f = sig[:, :hidden]
    silu_c = lin[:, hidden:2 * hidden] * sig[:, hidden:2 * hidden]
    sig_g = sig[:, 2 * hidden:]

    h_prev = h_ref[...].astype(jnp.float32)
    h_t = sig_f * h_prev + (1.0 - sig_f) * silu_c
    o_t = h_t * sig_g

    o_ref[...] = o_t.astype(o_ref.dtype)
    h_out_ref[...] = h_t.astype(h_out_ref.dtype)


def prepare_mlgru_weights(W_f, W_c, W_g, b_f, b_c, b_g):
    """Ternarize + transpose + fuse the gate weights ONCE (cache across steps).

    Returns:
      w_cat: (N, 3N) bf16, columns = [sign(W_f).T | sign(W_c).T | sign(W_g).T]
      b_cat: (1, 3N) f32,  columns = [b_f | b_c | b_g]
    """
    N = W_f.shape[0]
    w_cat = jnp.concatenate(
        [jnp.sign(W_f).T, jnp.sign(W_c).T, jnp.sign(W_g).T], axis=1
    ).astype(jnp.bfloat16)                                     # ternary -> exact in bf16
    b_cat = jnp.concatenate([b_f, b_c, b_g]).reshape(1, 3 * N).astype(jnp.float32)
    return w_cat, b_cat


def mlgru_cell_prepared(x_t, h_prev, w_cat, b_cat, eps=1e-8):
    """Pallas TPU forward of MLGRUCell using pre-fused weights. Returns (o_t, h_t)."""
    B, N = x_t.shape
    assert w_cat.shape == (N, 3 * N) and b_cat.shape == (1, 3 * N)

    # The activation quantizer's global abs-max couples all rows, and the whole
    # problem fits comfortably in VMEM at these sizes -> single program with
    # full-array blocks (no grid).
    vmem = pl.BlockSpec(memory_space=pltpu.MemorySpace.VMEM)
    o_t, h_t = pl.pallas_call(
        functools.partial(_mlgru_kernel, eps=eps, hidden=N),
        out_shape=(jax.ShapeDtypeStruct((B, N), jnp.float32),
                   jax.ShapeDtypeStruct((B, N), jnp.float32)),
        in_specs=[vmem] * 4,
        out_specs=(vmem, vmem),
        # Explicit VMEM budget: safe on v5e/v6e (16/32 MiB default scoped,
        # 128 MiB physical) and under v7x's 64 MiB physical VMEM.
        compiler_params=pltpu.CompilerParams(vmem_limit_bytes=32 * 1024 * 1024),
    )(x_t, h_prev, w_cat, b_cat)
    return o_t, h_t


def mlgru_cell(x_t, h_prev, W_f, W_c, W_g, b_f, b_c, b_g, eps=1e-8):
    """Convenience wrapper: prepare weights then run the kernel."""
    w_cat, b_cat = prepare_mlgru_weights(W_f, W_c, W_g, b_f, b_c, b_g)
    return mlgru_cell_prepared(x_t, h_prev, w_cat, b_cat, eps)


def _reference(x_t, h_prev, W_f, W_c, W_g, b_f, b_c, b_g, eps=1e-8):
    """Pure-JAX reference mirroring the PyTorch forward (for sanity checking)."""
    mean = jnp.mean(x_t, axis=-1, keepdims=True)
    var = jnp.mean((x_t - mean) ** 2, axis=-1, keepdims=True)
    r = 1.0 / jnp.sqrt(jnp.maximum(var + eps, 1e-10))
    y = r * (x_t - mean)
    y = jnp.where(jnp.isnan(y), 0.0, y)
    amax = jnp.max(jnp.abs(y))
    scale = jnp.where(jnp.logical_or(amax == 0.0, jnp.isnan(amax)), 1.0, amax / QMAX)
    yq = jnp.clip(jnp.round(y / scale), QMIN, QMAX) * scale

    def lin(W, b):
        return yq @ jnp.sign(W).T + b

    f = jax.nn.sigmoid(lin(W_f, b_f))
    c = jax.nn.silu(lin(W_c, b_c))
    g = jax.nn.sigmoid(lin(W_g, b_g))
    h_t = f * h_prev + (1.0 - f) * c
    return h_t * g, h_t


if __name__ == "__main__":
    B = 8             # batch
    N = 128           # input_size == hidden_size
    eps = 1e-8

    key = jax.random.PRNGKey(0)
    kx, kh, kwf, kwc, kwg, kbf, kbc, kbg = jax.random.split(key, 8)

    x_t = jax.random.normal(kx, (B, N), dtype=jnp.float32)
    h_prev = jax.random.normal(kh, (B, N), dtype=jnp.float32)
    W_f = jax.random.normal(kwf, (N, N), dtype=jnp.float32)
    W_c = jax.random.normal(kwc, (N, N), dtype=jnp.float32)
    W_g = jax.random.normal(kwg, (N, N), dtype=jnp.float32)
    b_f = jax.random.normal(kbf, (N,), dtype=jnp.float32)
    b_c = jax.random.normal(kbc, (N,), dtype=jnp.float32)
    b_g = jax.random.normal(kbg, (N,), dtype=jnp.float32)

    o_t, h_t = mlgru_cell(x_t, h_prev, W_f, W_c, W_g, b_f, b_c, b_g, eps)
    jax.block_until_ready((o_t, h_t))

    o_ref, h_ref = _reference(x_t, h_prev, W_f, W_c, W_g, b_f, b_c, b_g, eps)
    assert jnp.allclose(o_t, o_ref, atol=1e-3, rtol=1e-3), "o_t mismatch"
    assert jnp.allclose(h_t, h_ref, atol=1e-3, rtol=1e-3), "h_t mismatch"

    print("KERNEL_OK")
</pallas_src>

<mosaic_0001>
module attributes {stable_mosaic.version = 11 : i64} {
  func.func @_mlgru_kernel(%arg0: memref<8x128xf32, #tpu.memory_space<vmem>>, %arg1: memref<8x128xf32, #tpu.memory_space<vmem>>, %arg2: memref<128x384xbf16, #tpu.memory_space<vmem>>, %arg3: memref<1x384xf32, #tpu.memory_space<vmem>>, %arg4: memref<8x128xf32, #tpu.memory_space<vmem>>, %arg5: memref<8x128xf32, #tpu.memory_space<vmem>>) attributes {dimension_semantics = [], scalar_prefetch = 0 : i64, scratch_operands = 0 : i64, tpu.core_type = #tpu.core_type<tc>} {
    %c0 = arith.constant 0 : index
    %c0_0 = arith.constant 0 : index
    %0 = vector.load %arg0[%c0, %c0_0] : memref<8x128xf32, #tpu.memory_space<vmem>>, vector<8x128xf32>
    %cst = arith.constant dense<0.000000e+00> : vector<8xf32>
    %1 = vector.multi_reduction <add>, %0, %cst [1] : vector<8x128xf32> to vector<8xf32>
    %2 = vector.shape_cast %1 : vector<8xf32> to vector<8x1xf32>
    %cst_1 = arith.constant 1.280000e+02 : f32
    %3 = vector.broadcast %cst_1 : f32 to vector<8x1xf32>
    %4 = arith.divf %2, %3 : vector<8x1xf32>
    %5 = vector.broadcast %4 : vector<8x1xf32> to vector<8x128xf32>
    %6 = arith.subf %0, %5 : vector<8x128xf32>
    %7 = arith.mulf %6, %6 : vector<8x128xf32>
    %cst_2 = arith.constant dense<0.000000e+00> : vector<8xf32>
    %8 = vector.multi_reduction <add>, %7, %cst_2 [1] : vector<8x128xf32> to vector<8xf32>
    %9 = vector.shape_cast %8 : vector<8xf32> to vector<8x1xf32>
    %cst_3 = arith.constant 1.280000e+02 : f32
    %10 = vector.broadcast %cst_3 : f32 to vector<8x1xf32>
    %11 = arith.divf %9, %10 : vector<8x1xf32>
    %cst_4 = arith.constant 9.99999993E-9 : f32
    %12 = vector.broadcast %cst_4 : f32 to vector<8x1xf32>
    %13 = arith.addf %11, %12 : vector<8x1xf32>
    %cst_5 = arith.constant 1.000000e-10 : f32
    %14 = vector.broadcast %cst_5 : f32 to vector<8x1xf32>
    %15 = arith.maximumf %13, %14 : vector<8x1xf32>
    %16 = math.sqrt %15 : vector<8x1xf32>
    %cst_6 = arith.constant 1.000000e+00 : f32
    %17 = vector.broadcast %cst_6 : f32 to vector<8x1xf32>
    %18 = arith.divf %17, %16 : vector<8x1xf32>
    %19 = vector.broadcast %18 : vector<8x1xf32> to vector<8x128xf32>
    %20 = arith.mulf %19, %6 : vector<8x128xf32>
    %21 = arith.cmpf one, %20, %20 : vector<8x128xf32>
    %cst_7 = arith.constant 0.000000e+00 : f32
    %22 = vector.broadcast %cst_7 : f32 to vector<8x128xf32>
    %23 = arith.select %21, %22, %20 : vector<8x128xi1>, vector<8x128xf32>
    %24 = math.absf %23 : vector<8x128xf32>
    %25 = vector.shape_cast %24 : vector<8x128xf32> to vector<1x8x128xf32>
    %cst_8 = arith.constant dense<0xFF800000> : vector<1xf32>
    %26 = vector.multi_reduction <maximumf>, %25, %cst_8 [1, 2] : vector<1x8x128xf32> to vector<1xf32>
    %27 = vector.shape_cast %26 : vector<1xf32> to vector<1x1x1xf32>
    %28 = vector.extract %27[0, 0, 0] : f32 from vector<1x1x1xf32>
    %cst_9 = arith.constant 0.000000e+00 : f32
    %29 = arith.cmpf oeq, %28, %cst_9 : f32
    %30 = arith.cmpf one, %28, %28 : f32
    %31 = arith.ori %29, %30 : i1
    %cst_10 = arith.constant 1.270000e+02 : f32
    %32 = arith.divf %28, %cst_10 : f32
    %cst_11 = arith.constant 1.000000e+00 : f32
    %33 = arith.select %31, %cst_11, %32 : f32
    %34 = vector.broadcast %33 : f32 to vector<8x128xf32>
    %35 = arith.divf %23, %34 : vector<8x128xf32>
    %36 = math.roundeven %35 : vector<8x128xf32>
    %cst_12 = arith.constant -1.280000e+02 : f32
    %cst_13 = arith.constant 1.270000e+02 : f32
    %37 = vector.broadcast %cst_12 : f32 to vector<8x128xf32>
    %38 = arith.maximumf %37, %36 : vector<8x128xf32>
    %39 = vector.broadcast %cst_13 : f32 to vector<8x128xf32>
    %40 = arith.minimumf %39, %38 : vector<8x128xf32>
    %41 = arith.truncf %40 : vector<8x128xf32> to vector<8x128xbf16>
    %c0_14 = arith.constant 0 : index
    %c0_15 = arith.constant 0 : index
    %42 = vector.load %arg2[%c0_14, %c0_15] : memref<128x384xbf16, #tpu.memory_space<vmem>>, vector<128x384xbf16>
    %cst_16 = arith.constant dense<0.000000e+00> : vector<8x384xf32>
    %43 = tpu.matmul %41, %42, %cst_16 {dimension_numbers = #tpu.dot_dimension_numbers<[1], [0], [0], [1], [0, 0, 1, 1], [], []>} : vector<8x128xbf16>, vector<128x384xbf16>, vector<8x384xf32> -> vector<8x384xf32>
    %44 = vector.broadcast %33 : f32 to vector<8x384xf32>
    %45 = arith.mulf %43, %44 : vector<8x384xf32>
    %c0_17 = arith.constant 0 : index
    %c0_18 = arith.constant 0 : index
    %46 = vector.load %arg3[%c0_17, %c0_18] : memref<1x384xf32, #tpu.memory_space<vmem>>, vector<1x384xf32>
    %47 = vector.broadcast %46 : vector<1x384xf32> to vector<8x384xf32>
    %48 = arith.addf %45, %47 : vector<8x384xf32>
    %49 = arith.negf %48 : vector<8x384xf32>
    %50 = math.exp %49 : vector<8x384xf32>
    %cst_19 = arith.constant 1.000000e+00 : f32
    %51 = vector.broadcast %cst_19 : f32 to vector<8x384xf32>
    %52 = arith.addf %51, %50 : vector<8x384xf32>
    %53 = arith.divf %51, %52 : vector<8x384xf32>
    %54 = vector.extract_strided_slice %53 {offsets = [0, 0], sizes = [8, 128], strides = [1, 1]} : vector<8x384xf32> to vector<8x128xf32>
    %55 = vector.extract_strided_slice %48 {offsets = [0, 128], sizes = [8, 128], strides = [1, 1]} : vector<8x384xf32> to vector<8x128xf32>
    %56 = vector.extract_strided_slice %53 {offsets = [0, 128], sizes = [8, 128], strides = [1, 1]} : vector<8x384xf32> to vector<8x128xf32>
    %57 = arith.mulf %55, %56 : vector<8x128xf32>
    %58 = vector.extract_strided_slice %53 {offsets = [0, 256], sizes = [8, 128], strides = [1, 1]} : vector<8x384xf32> to vector<8x128xf32>
    %c0_20 = arith.constant 0 : index
    %c0_21 = arith.constant 0 : index
    %59 = vector.load %arg1[%c0_20, %c0_21] : memref<8x128xf32, #tpu.memory_space<vmem>>, vector<8x128xf32>
    %60 = arith.mulf %54, %59 : vector<8x128xf32>
    %cst_22 = arith.constant 1.000000e+00 : f32
    %61 = vector.broadcast %cst_22 : f32 to vector<8x128xf32>
    %62 = arith.subf %61, %54 : vector<8x128xf32>
    %63 = arith.mulf %62, %57 : vector<8x128xf32>
    %64 = arith.addf %60, %63 : vector<8x128xf32>
    %65 = arith.mulf %64, %58 : vector<8x128xf32>
    %c0_23 = arith.constant 0 : index
    %c0_24 = arith.constant 0 : index
    %66 = vector.load %arg4[%c0_23, %c0_24] : memref<8x128xf32, #tpu.memory_space<vmem>>, vector<8x128xf32>
    tpu.vector_store %arg4[%c0_23, %c0_24], %65 {strides = array<i32>} : memref<8x128xf32, #tpu.memory_space<vmem>>, vector<8x128xf32>,
    %c0_25 = arith.constant 0 : index
    %c0_26 = arith.constant 0 : index
    %67 = vector.load %arg5[%c0_25, %c0_26] : memref<8x128xf32, #tpu.memory_space<vmem>>, vector<8x128xf32>
    tpu.vector_store %arg5[%c0_25, %c0_26], %64 {strides = array<i32>} : memref<8x128xf32, #tpu.memory_space<vmem>>, vector<8x128xf32>,
    return
  }
}

</mosaic_0001>

<bundles_post_ra>
// kernel: tpu_custom_call.1
= control target key start
LH: loop header
LB: loop body
LE: loop exit
PB: predicated region body
PF: predicated region fallthrough
CT: control target
= control target key end

     0   :  { %11 = vsyncpa [#allocation3], 0  ;;  %s724_s0 = inlined_call_operand.hbm [shape: f32[8,128], index: 0, kind: input, shape index: {}]   ;;  %s725_s1 = inlined_call_operand.hbm [shape: f32[8,128], index: 1, kind: input, shape index: {}]   ;;  %s726_s2 = inlined_call_operand.hbm [shape: bf16[128,384], index: 2, kind: input, shape index: {}]   ;;  %s727_s3 = inlined_call_operand.vmem [shape: f32[1,384], index: 3, kind: input, shape index: {}]   ;;  %s728_s4 = inlined_call_operand.hbm [shape: f32[8,128], index: 4, kind: output, shape index: {0}]   ;;  %s729_s5 = inlined_call_operand.hbm [shape: f32[8,128], index: 5, kind: output, shape index: {1}]  }
   0x1   :  { %12 = vsyncpa [#allocation6], 0 }
   0x2   :  { %13 = vsyncpa [#allocation4], 0 }
   0x3   :  { %14 = vsyncpa [#allocation10], 0  ;;  %s662_s18 = smov [#allocation5]   ;;  %s663_s20 = smov [#allocation2]  }
   0x4   :  { %s31_s19 = sshll.u32 %s662_s18, 4  ;;  %s21_s21 = sshll.u32 %s663_s20, 4  ;;  %s32_s19 = int_to_ptr.vmem [resolvable:$true] %s31_s19  ;;  %s22_s21 = int_to_ptr.vmem [resolvable:$true] %s21_s21 }
   0x5   :  { %s562_s22 = scalar_lea.vmem %s32_s19, 128  ;;  %p567_p1 = scmp.lt.s32.totalorder %s32_s19, %s32_s19 }
   0x6   :  { %p563_p0 = scmp.ne.s32.totalorder %s32_s19, %s562_s22  ;;  %p568_p2 = scmp.lt.s32.totalorder %s562_s22, %s562_s22 }
   0x8   :  { %p569_p3 = por %p568_p2, %p567_p1 }
   0xa   :  { %p570_p4 = pnand %p569_p3, %p563_p0 }
   0xc   :  { %573 = shalt.err (!%p570_p4)
}
   0xd   :  { %34 = dma.hbm_to_vmem [thread:$0]  %s725_s1, 128, %s32_s19, [#allocation6]  }
   0xe   :  { %s582_s25 = scalar_lea.vmem %s22_s21, 128  ;;  %p587_p6 = scmp.lt.s32.totalorder %s22_s21, %s22_s21 }
   0xf   :  { %p583_p5 = scmp.ne.s32.totalorder %s22_s21, %s582_s25  ;;  %p588_p7 = scmp.lt.s32.totalorder %s582_s25, %s582_s25 }
  0x11   :  { %p589_p8 = por %p588_p7, %p587_p6 }
  0x13   :  { %p590_p9 = pnand %p589_p8, %p583_p5 }
  0x15   :  { %593 = shalt.err (!%p590_p9)
}
  0x16   :  { %24 = dma.hbm_to_vmem [thread:$0]  %s724_s0, 128, %s22_s21, [#allocation3]  }
  0x17   :  { %s664_s28 = smov [#allocation7]  }
  0x18   :  { %s40_s29 = sshll.u32 %s664_s28, 4  ;;  %s41_s29 = int_to_ptr.vmem [resolvable:$true] %s40_s29 }
  0x19   :  { %s602_s30 = scalar_lea.vmem %s41_s29, 3072  ;;  %p607_p11 = scmp.lt.s32.totalorder %s41_s29, %s41_s29 }
  0x1a   :  { %p603_p10 = scmp.ne.s32.totalorder %s41_s29, %s602_s30  ;;  %p608_p12 = scmp.lt.s32.totalorder %s602_s30, %s602_s30 }
  0x1c   :  { %p609_p13 = por %p608_p12, %p607_p11 }
  0x1e   :  { %p610_p0 = pnand %p609_p13, %p603_p10 }
  0x20   :  { %613 = shalt.err (!%p610_p0)
}
  0x21   :  { %s665_s1 = smov 192   ;;  %s666_s6 = smov 12  }
  0x22   :  { %46 = dma.hbm_to_vmem [thread:$0]  %s726_s2, 3072, %s41_s29, [#allocation6], %s665_s1, %s665_s1, %s666_s6  }
  0x23   :  { %654 = dma.done.wait [#allocation3], 128  }
  0x24   :  { %655 = vsyncadd [#allocation3], 4294967168 }
  0x25   :  { %656 = dma.done.wait [#allocation6], 3200  }
  0x26   :  { %657 = vsyncadd [#allocation6], 4294964096  ;;  %v59_v0 = vld [vmem:[#allocation2] sm:$0xff]  ;;  %v504_v18 = vld [vmem:[#allocation7 + $0xac] ss:$12 sps:$4 sm:$0xff]   ;;  %v667_v21 = vmov 0.0  }
  0x27   :  { %60 = vadd.xlane.f32.xlu0 %v59_v0  ;;  %v506_v19 = vld [vmem:[#allocation7 + $0xa8] ss:$12 sps:$4 sm:$0xff]   ;;  %v507_v20 = vld [vmem:[#allocation7 + $0xb0] ss:$12 sps:$4 sm:$0xff]   ;;  %267 = vmatprep.subr.bf16.mxu0 %v504_v18  ;;  %v511_v24 = vld [vmem:[#allocation7 + $0x98] ss:$12 sps:$4 sm:$0xff]  }
  0x28   :  { %464 = vmatprep.subr.bf16.mxu1 %v667_v21  ;;  %v508_v22 = vld [vmem:[#allocation7 + $0x94] ss:$12 sps:$4 sm:$0xff]   ;;  %268 = vmatpush1.bf16.msra.mxu0 %v506_v19  ;;  %v510_v23 = vld [vmem:[#allocation7 + $0x90] ss:$12 sps:$4 sm:$0xff]   ;;  %v514_v26 = vld [vmem:[#allocation7 + $0x78] ss:$12 sps:$4 sm:$0xff]  }
  0x29   :  { %465 = vmatpush3.bf16.msra.mxu1 %v507_v20  ;;  %269 = vmatprep.subr.bf16.mxu0 %v508_v22  ;;  %v512_v25 = vld [vmem:[#allocation7 + $0x7c] ss:$12 sps:$4 sm:$0xff]   ;;  %v515_v27 = vld [vmem:[#allocation7 + $0x80] ss:$12 sps:$4 sm:$0xff]   ;;  %v516_v28 = vld [vmem:[#allocation7 + $0x64] ss:$12 sps:$4 sm:$0xff]  }
  0x2a   :  { %466 = vmatprep.subr.bf16.mxu1 %v667_v21  ;;  %v668_v29 = vmov 0   ;;  %vm669_vm3 = vmmov 0   ;;  %v518_v30 = vld [vmem:[#allocation7 + $0x60] ss:$12 sps:$4 sm:$0xff]   ;;  %v519_v31 = vld [vmem:[#allocation7 + $0x68] ss:$12 sps:$4 sm:$0xff]  }
  0x2b   :  { %299 = vmatprep.mubr.bf16.mxu0 %v668_v29  ;;  %480 = vmatprep.mubr.msk.bf16.mxu1 %vm669_vm3, %v667_v21  ;;  %v520_v32 = vld [vmem:[#allocation7 + $0x4c] ss:$12 sps:$4 sm:$0xff]   ;;  %v522_v33 = vld [vmem:[#allocation7 + $0x48] ss:$12 sps:$4 sm:$0xff]   ;;  %v523_v34 = vld [vmem:[#allocation7 + $0x50] ss:$12 sps:$4 sm:$0xff]  }
  0x2c   :  { %270 = vmatpush1.bf16.msra.mxu0 %v510_v23  ;;  %v524_v35 = vld [vmem:[#allocation7 + $0x34] ss:$12 sps:$4 sm:$0xff]   ;;  %v526_v36 = vld [vmem:[#allocation7 + $0x30] ss:$12 sps:$4 sm:$0xff]   ;;  %v527_v37 = vld [vmem:[#allocation7 + $0x38] ss:$12 sps:$4 sm:$0xff]  }
  0x2d   :  { %467 = vmatpush3.bf16.msra.mxu1 %v511_v24  ;;  %271 = vmatprep.subr.bf16.mxu0 %v512_v25  ;;  %v528_v38 = vld [vmem:[#allocation7 + $0x1c] ss:$12 sps:$4 sm:$0xff]   ;;  %v530_v39 = vld [vmem:[#allocation7 + $0x18] ss:$12 sps:$4 sm:$0xff]   ;;  %v531_v40 = vld [vmem:[#allocation7 + $0x20] ss:$12 sps:$4 sm:$0xff]  }
  0x2e   :  { %468 = vmatprep.subr.bf16.mxu1 %v667_v21  ;;  %v532_v41 = vld [vmem:[#allocation7 + $0x4] ss:$12 sps:$4 sm:$0xff]   ;;  %v534_v42 = vld [vmem:[#allocation7] ss:$12 sps:$4 sm:$0xff]   ;;  %v535_v43 = vld [vmem:[#allocation7 + $0x8] ss:$12 sps:$4 sm:$0xff]  }
  0x2f   :  { %s671_s12 = smov [#allocation8]  }
  0x30   :  { %272 = vmatpush1.bf16.msra.mxu0 %v514_v26  ;;  %s404_s13 = sshll.u32 %s671_s12, 4  ;;  %s405_s13 = int_to_ptr.vmem [resolvable:$true] %s404_s13 }
  0x31   :  { %469 = vmatpush3.bf16.msra.mxu1 %v515_v27  ;;  %273 = vmatprep.subr.bf16.mxu0 %v516_v28 }
  0x32   :  { %470 = vmatprep.subr.bf16.mxu1 %v667_v21 }
  0x34   :  { %274 = vmatpush1.bf16.msra.mxu0 %v518_v30 }
  0x35   :  { %471 = vmatpush3.bf16.msra.mxu1 %v519_v31  ;;  %275 = vmatprep.subr.bf16.mxu0 %v520_v32 }
  0x36   :  { %472 = vmatprep.subr.bf16.mxu1 %v667_v21 }
  0x38   :  { %276 = vmatpush1.bf16.msra.mxu0 %v522_v33 }
  0x39   :  { %473 = vmatpush3.bf16.msra.mxu1 %v523_v34  ;;  %277 = vmatprep.subr.bf16.mxu0 %v524_v35  ;;  %v390_v34 = vld [vmem:[#allocation5] sm:$0xff] }
  0x3a   :  { %474 = vmatprep.subr.bf16.mxu1 %v667_v21 }
  0x3c   :  { %278 = vmatpush1.bf16.msra.mxu0 %v526_v36 }
  0x3d   :  { %475 = vmatpush3.bf16.msra.mxu1 %v527_v37  ;;  %279 = vmatprep.subr.bf16.mxu0 %v528_v38 }
  0x3e   :  { %476 = vmatprep.subr.bf16.mxu1 %v667_v21 }
  0x40   :  { %280 = vmatpush1.bf16.msra.mxu0 %v530_v39 }
  0x41   :  { %477 = vmatpush3.bf16.msra.mxu1 %v531_v40  ;;  %281 = vmatprep.subr.bf16.mxu0 %v532_v41 }
  0x42   :  { %478 = vmatprep.subr.bf16.mxu1 %v667_v21 }
  0x44   :  { %282 = vmatpush1.bf16.msra.mxu0 %v534_v42 }
  0x45   :  { %479 = vmatpush3.bf16.msra.mxu1 %v535_v43 }
  0xb0   :  { %v61_v1 = vpop.xlane.xlu0 %60 }
  0xb1   :  { %v63_v2 = vmul.f32 0.0078125, %v61_v1 }
  0xb3   :  { %v64_v3 = vsub.f32 %v59_v0, %v63_v2  ;;  %v353_v0 = vlaneseq }
  0xb5   :  { %v65_v4 = vmul.f32 %v64_v3, %v64_v3  ;;  %v354_v1 = vshrl.u32 %v353_v0, 7 }
  0xb7   :  { %66 = vadd.xlane.f32.xlu0 %v65_v4  ;;  %v355_v2 = vsub.s32 0, %v354_v1  ;;  %v351_v4 = vld [vmem:[%s727_s3] sm:$0x7]  ;;  %s670_s3 = smov [#allocation9]  }
  0xb8   :  { %s414_s11 = sshll.u32 %s670_s3, 4  ;;  %s415_s11 = int_to_ptr.vmem [resolvable:$true] %s414_s11 }
  0xb9   :  { %s614_s14 = scalar_lea.vmem %s415_s11, 128  ;;  %p619_p5 = scmp.lt.s32.totalorder %s415_s11, %s415_s11 }
  0xba   :  { %p615_p4 = scmp.ne.s32.totalorder %s415_s11, %s614_s14  ;;  %p620_p6 = scmp.lt.s32.totalorder %s614_s14, %s614_s14 }
  0xbc   :  { %p621_p7 = por %p620_p6, %p619_p5 }
  0xbe   :  { %p622_p8 = pnand %p621_p7, %p615_p4 }
 0x140   :  { %v67_v5 = vpop.xlane.xlu0 %66 }
 0x141   :  { %v68_v6 = vmul.f32 0.0078125, %v67_v5  ;;  %v359_v5 = vsub.s32 1, %v354_v1 }
 0x143   :  { %v69_v7 = vadd.f32 1e-08, %v68_v6  ;;  %v356_v6 = vrot.slane %v351_v4, %v355_v2 }
 0x145   :  { %v70_v8 = vmax.f32 %v69_v7, 1e-10 }
 0x147   :  { %536 = vrsqrt.f32 %v70_v8  ;;  %vm73_vm0 = vcmp.eq.f32.partialorder %v70_v8, inf  ;;  %v76_v11 = vand.u32 2147483648, %v70_v8  ;;  %vm75_vm1 = vcmp.eq.f32.partialorder %v70_v8, 0.0 }
 0x154   :  { %v537_v9 = vpop.eup %536 }
 0x155   :  { %v72_v10 = vmul.f32 %v537_v9, %v70_v8 }
 0x157   :  { %v74_v12 = vsel %vm73_vm0, %v70_v8, %v72_v10 }
 0x158   :  { %v77_v13 = vsel %vm75_vm1, %v76_v11, %v74_v12  ;;  %v360_v12 = vrot.slane %v351_v4, %v359_v5 }
 0x159   :  { %538 = vrcp.f32 %v77_v13 }
 0x166   :  { %v539_v14 = vpop.eup %538 }
 0x167   :  { %v80_v15 = vmul.f32 %v539_v14, %v64_v3  ;;  %v363_v3 = vsub.s32 2, %v354_v1 }
 0x169   :  { %vm81_vm2 = vcmp.ne.f32.partialorder %v80_v15, %v80_v15  ;;  %v364_v7 = vrot.slane %v351_v4, %v363_v3 }
 0x16a   :  { %v711_v16 = vsel %vm81_vm2, 0.0, %v80_v15 }
 0x16b   :  { %v83_v17 = vand.u32 2147483647, %v711_v16 }
 0x16d   :  { %84 = vmax.xlane.f32.xlu1 %v83_v17 }
 0x1f6   :  { %v85_v44 = vpop.xlane.xlu1 %84 }
 0x1f7   :  { %v86_v45 = vrot.slane %v85_v44, 4 }
 0x1f9   :  { %v87_v46 = vmax.f32 %v85_v44, %v86_v45 }
 0x1fb   :  { %v88_v47 = vrot.slane %v87_v46, 2 }
 0x1fd   :  { %v89_v48 = vmax.f32 %v87_v46, %v88_v47 }
 0x1ff   :  { %v90_v49 = vrot.slane %v89_v48, 1 }
 0x201   :  { %v91_v50 = vmax.f32 %v89_v48, %v90_v49 }
 0x203   :  { %484 = vpush %v91_v50 }
 0x234   :  { %s485_s0 = spop %484 }
 0x235   :  { %p93_p1 = scmp.eq.f32.partialorder %s485_s0, 0.0  ;;  %p94_p2 = scmp.ne.f32.partialorder %s485_s0, %s485_s0 }
 0x236   :  { %s98_s2 = smul.f32 0.007874016, %s485_s0 }
 0x237   :  { %p95_p3 = por %p94_p2, %p93_p1 }
 0x239   :  { %s731_s2 = smov (%p95_p3, %s98_s2), 1.0 }
 0x23a   :  { %v100_v51 = vstv %s731_s2 }
 0x23b   :  { %540 = vrcp.f32 %v100_v51 }
 0x248   :  { %v541_v52 = vpop.eup %540 }
 0x249   :  { %v102_v53 = vmul.f32 %v541_v52, %v711_v16 }
 0x24b   :  { %v488_v54 = vcvt.f32.s32 %v102_v53  ;;  %v486_v56 = vand.u32 2147483647, %v102_v53  ;;  %v491_v58 = vand.u32 2147483648, %v102_v53 }
 0x24d   :  { %v489_v55 = vcvt.s32.f32 %v488_v54  ;;  %vm487_vm4 = vcmp.lt.f32.partialorder %v486_v56, 8388608.0 }
 0x24f   :  { %v490_v57 = vand.u32 2147483647, %v489_v55 }
 0x251   :  { %v492_v59 = vor.u32 %v491_v58, %v490_v57 }
 0x253   :  { %v493_v60 = vsel %vm487_vm4, %v492_v59, %v102_v53 }
 0x254   :  { %v104_v61 = vmax.f32 %v493_v60, -128.0 }
 0x256   :  { %v105_v62 = vmin.f32 %v104_v61, 127.0 }
 0x258   :  { %v106_v63 = vpack.c.bf16 %v105_v62, %v105_v62 }
 0x25a   :  { %300 = vmatmul.mubr.bf16.vlgmr.msra.gmra.mxu0 %v106_v63  ;;  %481 = vmatmul.mubr.bf16.vlgmr.msra.gmra.mxu1 %v106_v63 }
 0x31a   :  { %v301_v8 = vpop.f32.mrf.mxu0  ;;  %v342_v9 = vpop.f32.mrf.mxu1 }
 0x31b   :  { %v348_v10 = vmul.f32 %v301_v8, %v100_v51  ;;  %v350_v11 = vmul.f32 %v342_v9, %v100_v51 }
 0x31c   :  { %v303_v13 = vpop.f32.mrf.mxu0  ;;  %v482_v14 = vpop.f32.mrf.mxu1 }
 0x31d   :  { %v368_v15 = vadd.f32 %v356_v6, %v348_v10  ;;  %v370_v16 = vadd.f32 %v364_v7, %v350_v11  ;;  %v349_v17 = vmul.f32 %v303_v13, %v100_v51 }
 0x31e   :  { %v305_v18 = vpop.f32.mrf.mxu0  ;;  %v345_v19 = vpop.f32.mrf.mxu1 }
 0x31f   :  { %v452_v20 = vmul.f32 -1.442695, %v368_v15  ;;  %v369_v21 = vadd.f32 %v360_v12, %v349_v17  ;;  %v454_v24 = vmul.f32 -1.442695, %v370_v16 }
 0x320   :  { %v306_v22 = vpop.f32.mrf.mxu0  ;;  %v483_v23 = vpop.f32.mrf.mxu1 }
 0x321   :  { %542 = vpow2.f32 %v452_v20  ;;  %v453_v25 = vmul.f32 -1.442695, %v369_v21 }
 0x323   :  { %544 = vpow2.f32 %v453_v25 }
 0x324   :  { %546 = vpow2.f32 %v454_v24 }
 0x32e   :  { %v543_v26 = vpop.eup %542 }
 0x32f   :  { %v380_v27 = vadd.f32 1.0, %v543_v26 }
 0x330   :  { %v545_v28 = vpop.eup %544 }
 0x331   :  { %548 = vrcp.f32 %v380_v27  ;;  %v381_v29 = vadd.f32 1.0, %v545_v28  ;;  %v547_v30 = vpop.eup %546 }
 0x332   :  { %v382_v31 = vadd.f32 1.0, %v547_v30 }
 0x333   :  { %550 = vrcp.f32 %v381_v29 }
 0x334   :  { %552 = vrcp.f32 %v382_v31 }
 0x33e   :  { %v549_v32 = vpop.eup %548 }
 0x33f   :  { %v392_v36 = vsub.f32 1.0, %v549_v32  ;;  %v391_v38 = vmul.f32 %v549_v32, %v390_v34 }
 0x340   :  { %v551_v33 = vpop.eup %550 }
 0x341   :  { %v389_v35 = vmul.f32 %v551_v33, %v369_v21  ;;  %v553_v40 = vpop.eup %552 }
 0x343   :  { %v393_v37 = vmul.f32 %v392_v36, %v389_v35 }
 0x345   :  { %v394_v39 = vadd.f32 %v393_v37, %v391_v38 }
 0x347   :  { %v395_v41 = vmul.f32 %v553_v40, %v394_v39  ;;  %397 = vst [vmem:[#allocation9] sm:$0xff] %v394_v39 }
 0x348   :  { %625 = shalt.err (!%p622_p8)
}
 0x349   :  { %417 = dma.vmem_to_hbm [thread:$0]  %s415_s11, 128, %s729_s5, [#allocation10]   ;;  %396 = vst [vmem:[#allocation8] sm:$0xff] %v395_v41 }
 0x34a   :  { %s634_s17 = scalar_lea.vmem %s405_s13, 128  ;;  %p639_p10 = scmp.lt.s32.totalorder %s405_s13, %s405_s13 }
 0x34b   :  { %p635_p9 = scmp.ne.s32.totalorder %s405_s13, %s634_s17  ;;  %p640_p11 = scmp.lt.s32.totalorder %s634_s17, %s634_s17 }
 0x34d   :  { %p641_p12 = por %p640_p11, %p639_p10 }
 0x34f   :  { %p642_p13 = pnand %p641_p12, %p635_p9 }
 0x351   :  { %645 = shalt.err (!%p642_p13)
}
 0x352   :  { %407 = dma.vmem_to_hbm [thread:$0]  %s405_s13, 128, %s728_s4, [#allocation4]  }
 0x353   :  { %658 = dma.done.wait [#allocation4], 128  }
 0x354   :  { %659 = vsyncadd [#allocation4], 4294967168 }
 0x355   :  { %660 = dma.done.wait [#allocation10], 128  }
 0x356   :  { %661 = vsyncadd [#allocation10], 4294967168 }
 0x357   :  { %424 = vsyncpa [#allocation3], 1 }
 0x358   :  { %425 = vsyncpa [#allocation6], 1 }
 0x359   :  { %426 = vsyncpa [#allocation4], 1 }
 0x35a   :  { %427 = vsyncpa [#allocation10], 1 }

</bundles_post_ra>
